<compile_context>
chip_gen: v7x
topology: tpu7x:2x2x1
jax: 0.10.0
libtpu: 0.0.40
codegen_flags: <defaults>
</compile_context>

<pallas_src>
import functools

import jax
import jax.numpy as jnp
from jax.experimental import pallas as pl
from jax.experimental.pallas import tpu as pltpu


def _round_up(x, m):
    return (x + m - 1) // m * m


# ----------------------------------------------------------------------------
# Fused kernel: two (3x3 conv + folded BN + ReLU) stages for one (image, row
# tile).  In-kernel layouts:
#   x_ref  : (1, Cin, TH*W)    main tile, flattened spatial on lanes
#   xt/xb  : (1, Cin, HB)      128-lane-wide halo blocks (top / bottom rows)
#   w*_ref : (Cout_p, 9*Cin_p) im2col weights, column = k*Cin_p + cin,
#                              k = (dy+1)*3 + (dx+1)
#   s*/b*  : (Cout_p, 1)       folded BN scale / bias (f32)
#   o_ref  : (1, C2, TH*W)
# Scratch (persist across grid steps, fully re-written where read):
#   yc/yl/yr : (Cmax_p, WBUF)  row buffer: raw / last-col-zeroed / first-col-
#                              zeroed copies (for dx = 0 / -1 / +1 taps)
#   pat      : (9*Cmax_p, (TH+2)*W)  im2col patch matrix
# ----------------------------------------------------------------------------
def _double_conv_kernel(x_ref, xt_ref, xb_ref,
                        w1_ref, s1_ref, b1_ref, w2_ref, s2_ref, b2_ref,
                        o_ref, yc_ref, yl_ref, yr_ref, pat_ref,
                        *, W, TH, P1, P2):
    th = pl.program_id(1)
    n_th = pl.num_programs(1)
    cdtype = yc_ref.dtype
    WBUF = yc_ref.shape[1]

    Cin = x_ref.shape[1]
    Cin_p = w1_ref.shape[1] // 9
    C1p = w1_ref.shape[0]
    HB = xt_ref.shape[2]
    W2 = 2 * W
    R1 = TH + 4                     # input rows held for stage 1
    O1 = TH + 2                     # stage-1 output rows (= stage-2 input rows)
    O2 = TH                         # final output rows

    taps = [(dy, dx) for dy in (-1, 0, 1) for dx in (-1, 0, 1)]
    col = jax.lax.broadcasted_iota(jnp.int32, (1, WBUF), 1)

    def masked_copies(C, P, rows):
        # Two pre-masked copies instead of 6 per-tap selects: yl has the last
        # column of every row zeroed (dx=-1 taps), yr the first column (dx=+1).
        # Columns outside the valid data window are forced to zero too, so the
        # one-element over-reads of the corner taps always hit zeros.
        in_data = (col >= P) & (col < P + rows * W)
        r = (col - P) % W
        v = yc_ref[0:C, :]
        z = jnp.zeros_like(v)
        yl_ref[0:C, :] = jnp.where((r == W - 1) | ~in_data, z, v)
        yr_ref[0:C, :] = jnp.where((r == 0) | ~in_data, z, v)

    def conv_stage(C_in_p, w_ref, s_ref, b_ref, P, out_rows):
        # Every 3x3 tap is a contiguous flat slice of the (pre-masked) row
        # buffers; stores land on sublane-aligned [k*C_in_p, (k+1)*C_in_p) rows.
        for k, (dy, dx) in enumerate(taps):
            src = yl_ref if dx < 0 else (yr_ref if dx > 0 else yc_ref)
            off = P + (1 + dy) * W + dx
            pat_ref[k * C_in_p:(k + 1) * C_in_p, 0:out_rows * W] = (
                src[0:C_in_p, off:off + out_rows * W])
        # One fat MXU contraction with f32 accumulation; BN + ReLU stay f32.
        acc = jnp.dot(w_ref[...], pat_ref[0:9 * C_in_p, 0:out_rows * W],
                      preferred_element_type=jnp.float32)
        return jnp.maximum(acc * s_ref[...] + b_ref[...], 0.0)

    # ----------------- stage 1: assemble input rows (with halo) -------------
    main0 = P1 + W2                                 # 128-lane aligned interior
    yc_ref[0:Cin, main0:main0 + TH * W] = x_ref[0].astype(cdtype)
    top = xt_ref[0, :, HB - W2:HB].astype(cdtype)   # rows t0-2, t0-1
    bot = xb_ref[0, :, 0:W2].astype(cdtype)         # rows t0+TH, t0+TH+1
    z2 = jnp.zeros((Cin, W2), cdtype)
    yc_ref[0:Cin, P1:main0] = jnp.where(th == 0, z2, top)
    yc_ref[0:Cin, main0 + TH * W:main0 + TH * W + W2] = jnp.where(
        th == n_th - 1, z2, bot)
    if Cin_p > Cin:                                 # K-alignment padding rows
        yc_ref[Cin:Cin_p, :] = jnp.zeros((Cin_p - Cin, WBUF), cdtype)
    masked_copies(Cin_p, P1, R1)

    y1 = conv_stage(Cin_p, w1_ref, s1_ref, b1_ref, P1, O1)   # (C1p, O1*W) f32

    # -------- stage 2: stage-1 epilogue stored straight into the row buffer --
    yc_ref[0:C1p, P2:P2 + O1 * W] = y1.astype(cdtype)
    zrow = jnp.zeros((C1p, W), cdtype)

    @pl.when(th == 0)           # zero padding of the stage-1 activation (top)
    def _():
        yc_ref[0:C1p, P2:P2 + W] = zrow

    @pl.when(th == n_th - 1)    # zero padding of the stage-1 activation (bottom)
    def _():
        yc_ref[0:C1p, P2 + (O1 - 1) * W:P2 + O1 * W] = zrow

    masked_copies(C1p, P2, O1)

    y2 = conv_stage(C1p, w2_ref, s2_ref, b2_ref, P2, O2)     # (C2, TH*W) f32
    o_ref[0] = y2.astype(o_ref.dtype)


def _pick_tile_h(H, W):
    best = None
    for th in range(1, H + 1):
        if H % th or (th * W) % 128:
            continue
        best = th
        if th * W >= 1024:
            return th
    return best if best is not None else H


@functools.partial(jax.jit, static_argnames=("tile_h",))
def double_conv(x_nchw, w1, s1, b1, w2, s2, b2, *, tile_h=None):
    """Fused DoubleConv forward (NCHW in / NCHW out, inference BN).

    w1 : (C1p, 9*Cin_p) folded + channel-padded im2col weights of stage 1.
    w2 : (C2,  9*C1p)   folded + channel-padded im2col weights of stage 2.
    s*/b* : (C, 1) f32 folded BN scale / bias.  The weight dtype selects the
    MXU compute dtype (f32 or bf16); the output is emitted in that dtype.
    """
    N, Cin, H, W = x_nchw.shape
    C1p, K1 = w1.shape
    C2, K2 = w2.shape
    Cin_p = K1 // 9
    assert K1 == 9 * Cin_p and K2 == 9 * C1p and Cin_p >= Cin
    cdtype = w1.dtype

    TH = _pick_tile_h(H, W) if tile_h is None else tile_h
    assert H % TH == 0, "tile_h must divide H"
    n_th = H // TH
    HW, THW = H * W, TH * W
    HB = _round_up(2 * W, 128)               # halo block width (lanes)
    assert THW % 128 == 0 or n_th == 1
    assert THW % HB == 0 and HW >= HB and HW % HB == 0

    # Leading dead pad so the big interior writes are 128-lane aligned and the
    # corner taps never index below column 0 of the row buffers.
    P1 = (-2 * W) % 128 or 128
    P2 = 128
    WBUF = _round_up(max(P1 + (TH + 4) * W, P2 + (TH + 2) * W) + 1, 128)
    Cmax_p = max(Cin_p, C1p)
    BT = THW // HB                           # halo blocks per tile
    NB = HW // HB                            # halo blocks per image

    # Free reshape (merges contiguous trailing dims) + cast to the compute
    # dtype at the boundary (bf16 path halves HBM activation traffic).
    x_flat = x_nchw.reshape(N, Cin, HW).astype(cdtype)

    out = pl.pallas_call(
        functools.partial(_double_conv_kernel, W=W, TH=TH, P1=P1, P2=P2),
        out_shape=jax.ShapeDtypeStruct((N, C2, HW), cdtype),
        grid=(N, n_th),
        in_specs=[
            # main tile (lane-dense, TH*W multiple of 128)
            pl.BlockSpec((1, Cin, THW), lambda n, t: (n, 0, t)),
            # top halo rows: last 2W lanes of the aligned block just above
            pl.BlockSpec((1, Cin, HB),
                         lambda n, t: (n, 0, jnp.maximum(t * BT - 1, 0))),
            # bottom halo rows: first 2W lanes of the aligned block just below
            pl.BlockSpec((1, Cin, HB),
                         lambda n, t: (n, 0, jnp.minimum((t + 1) * BT, NB - 1))),
            pl.BlockSpec((C1p, 9 * Cin_p), lambda n, t: (0, 0)),
            pl.BlockSpec((C1p, 1), lambda n, t: (0, 0)),
            pl.BlockSpec((C1p, 1), lambda n, t: (0, 0)),
            pl.BlockSpec((C2, 9 * C1p), lambda n, t: (0, 0)),
            pl.BlockSpec((C2, 1), lambda n, t: (0, 0)),
            pl.BlockSpec((C2, 1), lambda n, t: (0, 0)),
        ],
        out_specs=pl.BlockSpec((1, C2, THW), lambda n, t: (n, 0, t)),
        scratch_shapes=[
            pltpu.VMEM((Cmax_p, WBUF), cdtype),            # raw rows
            pltpu.VMEM((Cmax_p, WBUF), cdtype),            # last column zeroed
            pltpu.VMEM((Cmax_p, WBUF), cdtype),            # first column zeroed
            pltpu.VMEM((9 * Cmax_p, (TH + 2) * W), cdtype),  # im2col patches
        ],
        compiler_params=pltpu.CompilerParams(
            # both axes independent -> megacore sharding on v7x even at N == 1
            dimension_semantics=("parallel", "parallel"),
            vmem_limit_bytes=48 * 1024 * 1024),
    )(x_flat, x_flat, x_flat, w1, s1, b1, w2, s2, b2)

    return out.reshape(N, C2, H, W)


# ----------------------------------------------------------------------------
# Parameter construction (deterministic, mirrors nn.Conv2d / nn.BatchNorm2d).
# ----------------------------------------------------------------------------
def make_stage_params(key, in_ch, out_ch):
    kw, kb, kg, kbeta, km, kv = jax.random.split(key, 6)
    w = jax.random.normal(kw, (out_ch, in_ch, 3, 3), jnp.float32) * 0.1  # OIHW
    b = jax.random.normal(kb, (out_ch,), jnp.float32) * 0.1
    gamma = 1.0 + 0.1 * jax.random.normal(kg, (out_ch,), jnp.float32)
    beta = 0.1 * jax.random.normal(kbeta, (out_ch,), jnp.float32)
    running_mean = 0.1 * jax.random.normal(km, (out_ch,), jnp.float32)
    running_var = jnp.abs(jax.random.normal(kv, (out_ch,), jnp.float32)) + 0.5
    return dict(w=w, b=b, gamma=gamma, beta=beta,
                mean=running_mean, var=running_var)


def fold_stage(p, cin_pad, cout_pad, eps=1e-5, compute_dtype=jnp.float32):
    """Fold BN (eval) + conv bias into (w_im2col, scale, bias), channel-padded.

    Padded output channels get zero weights / zero scale / zero bias, so after
    ReLU they are exactly zero; padded input channels get zero weight columns.
    """
    out_ch, in_ch = p["w"].shape[0], p["w"].shape[1]
    scale = p["gamma"] / jnp.sqrt(p["var"] + eps)
    bias = p["beta"] + scale * (p["b"] - p["mean"])
    # OIHW -> (Cout, ky, kx, Cin) -> (Cout, 9, Cin), column = k*Cin_pad + cin
    wk = jnp.transpose(p["w"], (0, 2, 3, 1)).reshape(out_ch, 9, in_ch)
    wk = jnp.pad(wk, ((0, cout_pad - out_ch), (0, 0), (0, cin_pad - in_ch)))
    wk = wk.reshape(cout_pad, 9 * cin_pad)
    scale = jnp.pad(scale, (0, cout_pad - out_ch))
    bias = jnp.pad(bias, (0, cout_pad - out_ch))
    return (wk.astype(compute_dtype),
            scale.reshape(cout_pad, 1).astype(jnp.float32),
            bias.reshape(cout_pad, 1).astype(jnp.float32))


# ----------------------------------------------------------------------------
# Pure-JAX reference (correctness check of the fused Pallas path).
# ----------------------------------------------------------------------------
def ref_stage(x_nchw, p, eps=1e-5):
    y = jax.lax.conv_general_dilated(
        x_nchw, p["w"], window_strides=(1, 1), padding=((1, 1), (1, 1)),
        dimension_numbers=("NCHW", "OIHW", "NCHW"))
    y = y + p["b"][None, :, None, None]
    y = (y - p["mean"][None, :, None, None]) / jnp.sqrt(
        p["var"][None, :, None, None] + eps)
    y = y * p["gamma"][None, :, None, None] + p["beta"][None, :, None, None]
    return jnp.maximum(y, 0.0)


if __name__ == "__main__":
    key = jax.random.PRNGKey(0)
    kx, k1, k2 = jax.random.split(key, 3)

    N, in_ch, out_ch, H, W = 2, 4, 8, 16, 16
    x = jax.random.normal(kx, (N, in_ch, H, W), jnp.float32)

    p1 = make_stage_params(k1, in_ch, out_ch)
    p2 = make_stage_params(k2, out_ch, out_ch)
    ref = ref_stage(ref_stage(x, p1), p2)

    # ---- float32 path: exact module semantics, tight tolerance --------------
    cin_p, c1_p = _round_up(in_ch, 8), _round_up(out_ch, 8)
    w1, s1, b1 = fold_stage(p1, cin_p, c1_p, compute_dtype=jnp.float32)
    w2, s2, b2 = fold_stage(p2, c1_p, out_ch, compute_dtype=jnp.float32)
    out_f32 = jax.block_until_ready(
        double_conv(x, w1, s1, b1, w2, s2, b2, tile_h=8))   # grid (2, 2)
    assert out_f32.shape == (N, out_ch, H, W)
    assert jnp.allclose(out_f32, ref, atol=5e-4, rtol=5e-4), float(
        jnp.max(jnp.abs(out_f32 - ref)))

    # ---- bf16 fast path (bf16 operands + activations, f32 accumulation) -----
    cin_p16, c1_p16 = _round_up(in_ch, 16), _round_up(out_ch, 16)
    w1b, s1b, b1b = fold_stage(p1, cin_p16, c1_p16, compute_dtype=jnp.bfloat16)
    w2b, s2b, b2b = fold_stage(p2, c1_p16, out_ch, compute_dtype=jnp.bfloat16)
    out_bf16 = jax.block_until_ready(
        double_conv(x, w1b, s1b, b1b, w2b, s2b, b2b, tile_h=8))
    assert out_bf16.shape == (N, out_ch, H, W)
    assert jnp.allclose(out_bf16.astype(jnp.float32), ref, atol=1e-1, rtol=1e-1), \
        float(jnp.max(jnp.abs(out_bf16.astype(jnp.float32) - ref)))

    print("KERNEL_OK")
</pallas_src>

<mosaic_0001>
module attributes {stable_mosaic.version = 11 : i64} {
  func.func @_double_conv_kernel(%arg0: i32, %arg1: i32, %arg2: memref<1x4x128xf32, #tpu.memory_space<vmem>>, %arg3: memref<1x4x128xf32, #tpu.memory_space<vmem>>, %arg4: memref<1x4x128xf32, #tpu.memory_space<vmem>>, %arg5: memref<8x72xf32, #tpu.memory_space<vmem>>, %arg6: memref<8x1xf32, #tpu.memory_space<vmem>>, %arg7: memref<8x1xf32, #tpu.memory_space<vmem>>, %arg8: memref<8x72xf32, #tpu.memory_space<vmem>>, %arg9: memref<8x1xf32, #tpu.memory_space<vmem>>, %arg10: memref<8x1xf32, #tpu.memory_space<vmem>>, %arg11: memref<1x8x128xf32, #tpu.memory_space<vmem>>, %arg12: memref<8x384xf32, #tpu.memory_space<vmem>>, %arg13: memref<8x384xf32, #tpu.memory_space<vmem>>, %arg14: memref<8x384xf32, #tpu.memory_space<vmem>>, %arg15: memref<72x160xf32, #tpu.memory_space<vmem>>) attributes {dimension_semantics = [#tpu.dimension_semantics<parallel>, #tpu.dimension_semantics<parallel>], iteration_bounds = array<i64: 2, 2>, scalar_prefetch = 0 : i64, scratch_operands = 4 : i64, tpu.core_type = #tpu.core_type<tc>, window_params = [{transform_indices = @transform_0, window_bounds = array<i64: 1, 4, 128>}, {transform_indices = @transform_1, window_bounds = array<i64: 1, 4, 128>}, {transform_indices = @transform_2, window_bounds = array<i64: 1, 4, 128>}, {pipeline_mode = #tpu.pipeline_mode<synchronous>, transform_indices = @transform_3, window_bounds = array<i64: 8, 72>}, {pipeline_mode = #tpu.pipeline_mode<synchronous>, transform_indices = @transform_4, window_bounds = array<i64: 8, 1>}, {pipeline_mode = #tpu.pipeline_mode<synchronous>, transform_indices = @transform_5, window_bounds = array<i64: 8, 1>}, {pipeline_mode = #tpu.pipeline_mode<synchronous>, transform_indices = @transform_6, window_bounds = array<i64: 8, 72>}, {pipeline_mode = #tpu.pipeline_mode<synchronous>, transform_indices = @transform_7, window_bounds = array<i64: 8, 1>}, {pipeline_mode = #tpu.pipeline_mode<synchronous>, transform_indices = @transform_8, window_bounds = array<i64: 8, 1>}, {transform_indices = @transform_9, window_bounds = array<i64: 1, 8, 128>}]} {
    %0 = tpu.iota {dimensions = array<i32: 1>} : vector<1x384xi32>
    %c0 = arith.constant 0 : index
    %c0_0 = arith.constant 0 : index
    %c0_1 = arith.constant 0 : index
    %1 = vector.load %arg2[%c0, %c0_0, %c0_1] : memref<1x4x128xf32, #tpu.memory_space<vmem>>, vector<1x4x128xf32>
    %2 = vector.shape_cast %1 : vector<1x4x128xf32> to vector<4x128xf32>
    %c0_2 = arith.constant 0 : index
    %c128 = arith.constant 128 : index
    %3 = vector.load %arg12[%c0_2, %c128] : memref<8x384xf32, #tpu.memory_space<vmem>>, vector<4x128xf32>
    tpu.vector_store %arg12[%c0_2, %c128], %2 {strides = array<i32>} : memref<8x384xf32, #tpu.memory_space<vmem>>, vector<4x128xf32>,
    %c0_3 = arith.constant 0 : index
    %c0_4 = arith.constant 0 : index
    %c96 = arith.constant 96 : index
    %4 = vector.load %arg3[%c0_3, %c0_4, %c96] : memref<1x4x128xf32, #tpu.memory_space<vmem>>, vector<1x4x32xf32>
    %5 = vector.shape_cast %4 : vector<1x4x32xf32> to vector<4x32xf32>
    %c0_5 = arith.constant 0 : index
    %c0_6 = arith.constant 0 : index
    %c0_7 = arith.constant 0 : index
    %6 = vector.load %arg4[%c0_5, %c0_6, %c0_7] : memref<1x4x128xf32, #tpu.memory_space<vmem>>, vector<1x4x32xf32>
    %7 = vector.shape_cast %6 : vector<1x4x32xf32> to vector<4x32xf32>
    %cst = arith.constant 0.000000e+00 : f32
    %8 = vector.broadcast %cst : f32 to vector<4x32xf32>
    %c0_i32 = arith.constant 0 : i32
    %9 = arith.cmpi eq, %arg1, %c0_i32 : i32
    %10 = arith.select %9, %8, %5 : vector<4x32xf32>
    %c0_8 = arith.constant 0 : index
    %c96_9 = arith.constant 96 : index
    %11 = vector.load %arg12[%c0_8, %c96_9] : memref<8x384xf32, #tpu.memory_space<vmem>>, vector<4x32xf32>
    tpu.vector_store %arg12[%c0_8, %c96_9], %10 {strides = array<i32>} : memref<8x384xf32, #tpu.memory_space<vmem>>, vector<4x32xf32>,
    %c1_i32 = arith.constant 1 : i32
    %12 = arith.cmpi eq, %arg1, %c1_i32 : i32
    %13 = arith.select %12, %8, %7 : vector<4x32xf32>
    %c0_10 = arith.constant 0 : index
    %c256 = arith.constant 256 : index
    %14 = vector.load %arg12[%c0_10, %c256] : memref<8x384xf32, #tpu.memory_space<vmem>>, vector<4x32xf32>
    tpu.vector_store %arg12[%c0_10, %c256], %13 {strides = array<i32>} : memref<8x384xf32, #tpu.memory_space<vmem>>, vector<4x32xf32>,
    %cst_11 = arith.constant 0.000000e+00 : f32
    %15 = vector.broadcast %cst_11 : f32 to vector<4x384xf32>
    %c4 = arith.constant 4 : index
    %c0_12 = arith.constant 0 : index
    %16 = vector.load %arg12[%c4, %c0_12] : memref<8x384xf32, #tpu.memory_space<vmem>>, vector<4x384xf32>
    tpu.vector_store %arg12[%c4, %c0_12], %15 {strides = array<i32>} : memref<8x384xf32, #tpu.memory_space<vmem>>, vector<4x384xf32>,
    %c96_i32 = arith.constant 96 : i32
    %17 = vector.broadcast %c96_i32 : i32 to vector<1x384xi32>
    %18 = arith.cmpi sge, %0, %17 : vector<1x384xi32>
    %c288_i32 = arith.constant 288 : i32
    %19 = vector.broadcast %c288_i32 : i32 to vector<1x384xi32>
    %20 = arith.cmpi slt, %0, %19 : vector<1x384xi32>
    %21 = arith.andi %18, %20 : vector<1x384xi1>
    %c96_i32_13 = arith.constant 96 : i32
    %22 = vector.broadcast %c96_i32_13 : i32 to vector<1x384xi32>
    %23 = arith.subi %0, %22 : vector<1x384xi32>
    %c16_i32 = arith.constant 16 : i32
    %c0_i32_14 = arith.constant 0 : i32
    %24 = arith.cmpi eq, %c16_i32, %c0_i32_14 : i32
    %c1_i32_15 = arith.constant 1 : i32
    %25 = arith.select %24, %c1_i32_15, %c16_i32 : i32
    %26 = vector.broadcast %25 : i32 to vector<1x384xi32>
    %27 = arith.remsi %23, %26 : vector<1x384xi32>
    %c0_i32_16 = arith.constant 0 : i32
    %28 = vector.broadcast %c0_i32_16 : i32 to vector<1x384xi32>
    %29 = arith.cmpi ne, %27, %28 : vector<1x384xi32>
    %c0_i32_17 = arith.constant 0 : i32
    %30 = vector.broadcast %c0_i32_17 : i32 to vector<1x384xi32>
    %31 = arith.cmpi slt, %27, %30 : vector<1x384xi32>
    %c0_i32_18 = arith.constant 0 : i32
    %32 = arith.cmpi slt, %25, %c0_i32_18 : i32
    %33 = vector.broadcast %32 : i1 to vector<1x384xi1>
    %34 = vector.broadcast %33 : vector<1x384xi1> to vector<1x384xi1>
    %35 = arith.xori %31, %34 : vector<1x384xi1>
    %36 = arith.andi %35, %29 : vector<1x384xi1>
    %37 = vector.broadcast %25 : i32 to vector<1x384xi32>
    %38 = arith.addi %27, %37 : vector<1x384xi32>
    %39 = arith.select %36, %38, %27 : vector<1x384xi1>, vector<1x384xi32>
    %c0_19 = arith.constant 0 : index
    %c0_20 = arith.constant 0 : index
    %40 = vector.load %arg12[%c0_19, %c0_20] : memref<8x384xf32, #tpu.memory_space<vmem>>, vector<8x384xf32>
    %cst_21 = arith.constant 0.000000e+00 : f32
    %41 = vector.broadcast %cst_21 : f32 to vector<8x384xf32>
    %c15_i32 = arith.constant 15 : i32
    %42 = vector.broadcast %c15_i32 : i32 to vector<1x384xi32>
    %43 = arith.cmpi eq, %39, %42 : vector<1x384xi32>
    %cst_22 = arith.constant dense<true> : vector<1x384xi1>
    %44 = arith.xori %21, %cst_22 : vector<1x384xi1>
    %45 = arith.ori %43, %44 : vector<1x384xi1>
    %46 = vector.shape_cast %45 : vector<1x384xi1> to vector<1x384xi1>
    %47 = vector.broadcast %46 : vector<1x384xi1> to vector<8x384xi1>
    %48 = arith.select %47, %41, %40 : vector<8x384xi1>, vector<8x384xf32>
    %c0_23 = arith.constant 0 : index
    %c0_24 = arith.constant 0 : index
    %49 = vector.load %arg13[%c0_23, %c0_24] : memref<8x384xf32, #tpu.memory_space<vmem>>, vector<8x384xf32>
    tpu.vector_store %arg13[%c0_23, %c0_24], %48 {strides = array<i32>} : memref<8x384xf32, #tpu.memory_space<vmem>>, vector<8x384xf32>,
    %c0_i32_25 = arith.constant 0 : i32
    %50 = vector.broadcast %c0_i32_25 : i32 to vector<1x384xi32>
    %51 = arith.cmpi eq, %39, %50 : vector<1x384xi32>
    %cst_26 = arith.constant dense<true> : vector<1x384xi1>
    %52 = arith.xori %21, %cst_26 : vector<1x384xi1>
    %53 = arith.ori %51, %52 : vector<1x384xi1>
    %54 = vector.shape_cast %53 : vector<1x384xi1> to vector<1x384xi1>
    %55 = vector.broadcast %54 : vector<1x384xi1> to vector<8x384xi1>
    %56 = arith.select %55, %41, %40 : vector<8x384xi1>, vector<8x384xf32>
    %c0_27 = arith.constant 0 : index
    %c0_28 = arith.constant 0 : index
    %57 = vector.load %arg14[%c0_27, %c0_28] : memref<8x384xf32, #tpu.memory_space<vmem>>, vector<8x384xf32>
    tpu.vector_store %arg14[%c0_27, %c0_28], %56 {strides = array<i32>} : memref<8x384xf32, #tpu.memory_space<vmem>>, vector<8x384xf32>,
    %c0_29 = arith.constant 0 : index
    %c95 = arith.constant 95 : index
    %58 = vector.load %arg13[%c0_29, %c95] : memref<8x384xf32, #tpu.memory_space<vmem>>, vector<8x160xf32>
    %c0_30 = arith.constant 0 : index
    %c0_31 = arith.constant 0 : index
    %59 = vector.load %arg15[%c0_30, %c0_31] : memref<72x160xf32, #tpu.memory_space<vmem>>, vector<8x160xf32>
    tpu.vector_store %arg15[%c0_30, %c0_31], %58 {strides = array<i32>} : memref<72x160xf32, #tpu.memory_space<vmem>>, vector<8x160xf32>,
    %c0_32 = arith.constant 0 : index
    %c96_33 = arith.constant 96 : index
    %60 = vector.load %arg12[%c0_32, %c96_33] : memref<8x384xf32, #tpu.memory_space<vmem>>, vector<8x160xf32>
    %c8 = arith.constant 8 : index
    %c0_34 = arith.constant 0 : index
    %61 = vector.load %arg15[%c8, %c0_34] : memref<72x160xf32, #tpu.memory_space<vmem>>, vector<8x160xf32>
    tpu.vector_store %arg15[%c8, %c0_34], %60 {strides = array<i32>} : memref<72x160xf32, #tpu.memory_space<vmem>>, vector<8x160xf32>,
    %c0_35 = arith.constant 0 : index
    %c97 = arith.constant 97 : index
    %62 = vector.load %arg14[%c0_35, %c97] : memref<8x384xf32, #tpu.memory_space<vmem>>, vector<8x160xf32>
    %c16 = arith.constant 16 : index
    %c0_36 = arith.constant 0 : index
    %63 = vector.load %arg15[%c16, %c0_36] : memref<72x160xf32, #tpu.memory_space<vmem>>, vector<8x160xf32>
    tpu.vector_store %arg15[%c16, %c0_36], %62 {strides = array<i32>} : memref<72x160xf32, #tpu.memory_space<vmem>>, vector<8x160xf32>,
    %c0_37 = arith.constant 0 : index
    %c111 = arith.constant 111 : index
    %64 = vector.load %arg13[%c0_37, %c111] : memref<8x384xf32, #tpu.memory_space<vmem>>, vector<8x160xf32>
    %c24 = arith.constant 24 : index
    %c0_38 = arith.constant 0 : index
    %65 = vector.load %arg15[%c24, %c0_38] : memref<72x160xf32, #tpu.memory_space<vmem>>, vector<8x160xf32>
    tpu.vector_store %arg15[%c24, %c0_38], %64 {strides = array<i32>} : memref<72x160xf32, #tpu.memory_space<vmem>>, vector<8x160xf32>,
    %c0_39 = arith.constant 0 : index
    %c112 = arith.constant 112 : index
    %66 = vector.load %arg12[%c0_39, %c112] : memref<8x384xf32, #tpu.memory_space<vmem>>, vector<8x160xf32>
    %c32 = arith.constant 32 : index
    %c0_40 = arith.constant 0 : index
    %67 = vector.load %arg15[%c32, %c0_40] : memref<72x160xf32, #tpu.memory_space<vmem>>, vector<8x160xf32>
    tpu.vector_store %arg15[%c32, %c0_40], %66 {strides = array<i32>} : memref<72x160xf32, #tpu.memory_space<vmem>>, vector<8x160xf32>,
    %c0_41 = arith.constant 0 : index
    %c113 = arith.constant 113 : index
    %68 = vector.load %arg14[%c0_41, %c113] : memref<8x384xf32, #tpu.memory_space<vmem>>, vector<8x160xf32>
    %c40 = arith.constant 40 : index
    %c0_42 = arith.constant 0 : index
    %69 = vector.load %arg15[%c40, %c0_42] : memref<72x160xf32, #tpu.memory_space<vmem>>, vector<8x160xf32>
    tpu.vector_store %arg15[%c40, %c0_42], %68 {strides = array<i32>} : memref<72x160xf32, #tpu.memory_space<vmem>>, vector<8x160xf32>,
    %c0_43 = arith.constant 0 : index
    %c127 = arith.constant 127 : index
    %70 = vector.load %arg13[%c0_43, %c127] : memref<8x384xf32, #tpu.memory_space<vmem>>, vector<8x160xf32>
    %c48 = arith.constant 48 : index
    %c0_44 = arith.constant 0 : index
    %71 = vector.load %arg15[%c48, %c0_44] : memref<72x160xf32, #tpu.memory_space<vmem>>, vector<8x160xf32>
    tpu.vector_store %arg15[%c48, %c0_44], %70 {strides = array<i32>} : memref<72x160xf32, #tpu.memory_space<vmem>>, vector<8x160xf32>,
    %c0_45 = arith.constant 0 : index
    %c128_46 = arith.constant 128 : index
    %72 = vector.load %arg12[%c0_45, %c128_46] : memref<8x384xf32, #tpu.memory_space<vmem>>, vector<8x160xf32>
    %c56 = arith.constant 56 : index
    %c0_47 = arith.constant 0 : index
    %73 = vector.load %arg15[%c56, %c0_47] : memref<72x160xf32, #tpu.memory_space<vmem>>, vector<8x160xf32>
    tpu.vector_store %arg15[%c56, %c0_47], %72 {strides = array<i32>} : memref<72x160xf32, #tpu.memory_space<vmem>>, vector<8x160xf32>,
    %c0_48 = arith.constant 0 : index
    %c129 = arith.constant 129 : index
    %74 = vector.load %arg14[%c0_48, %c129] : memref<8x384xf32, #tpu.memory_space<vmem>>, vector<8x160xf32>
    %c64 = arith.constant 64 : index
    %c0_49 = arith.constant 0 : index
    %75 = vector.load %arg15[%c64, %c0_49] : memref<72x160xf32, #tpu.memory_space<vmem>>, vector<8x160xf32>
    tpu.vector_store %arg15[%c64, %c0_49], %74 {strides = array<i32>} : memref<72x160xf32, #tpu.memory_space<vmem>>, vector<8x160xf32>,
    %c0_50 = arith.constant 0 : index
    %c0_51 = arith.constant 0 : index
    %76 = vector.load %arg5[%c0_50, %c0_51] : memref<8x72xf32, #tpu.memory_space<vmem>>, vector<8x72xf32>
    %c0_52 = arith.constant 0 : index
    %c0_53 = arith.constant 0 : index
    %77 = vector.load %arg15[%c0_52, %c0_53] : memref<72x160xf32, #tpu.memory_space<vmem>>, vector<72x160xf32>
    %cst_54 = arith.constant dense<0.000000e+00> : vector<8x160xf32>
    %78 = tpu.matmul %76, %77, %cst_54 {dimension_numbers = #tpu.dot_dimension_numbers<[1], [0], [0], [1], [0, 0, 1, 1], [], []>} : vector<8x72xf32>, vector<72x160xf32>, vector<8x160xf32> -> vector<8x160xf32>
    %c0_55 = arith.constant 0 : index
    %c0_56 = arith.constant 0 : index
    %79 = vector.load %arg6[%c0_55, %c0_56] : memref<8x1xf32, #tpu.memory_space<vmem>>, vector<8x1xf32>
    %80 = vector.broadcast %79 : vector<8x1xf32> to vector<8x160xf32>
    %81 = arith.mulf %78, %80 : vector<8x160xf32>
    %c0_57 = arith.constant 0 : index
    %c0_58 = arith.constant 0 : index
    %82 = vector.load %arg7[%c0_57, %c0_58] : memref<8x1xf32, #tpu.memory_space<vmem>>, vector<8x1xf32>
    %83 = vector.broadcast %82 : vector<8x1xf32> to vector<8x160xf32>
    %84 = arith.addf %81, %83 : vector<8x160xf32>
    %cst_59 = arith.constant 0.000000e+00 : f32
    %85 = vector.broadcast %cst_59 : f32 to vector<8x160xf32>
    %86 = arith.maximumf %84, %85 : vector<8x160xf32>
    %c0_60 = arith.constant 0 : index
    %c128_61 = arith.constant 128 : index
    %87 = vector.load %arg12[%c0_60, %c128_61] : memref<8x384xf32, #tpu.memory_space<vmem>>, vector<8x160xf32>
    tpu.vector_store %arg12[%c0_60, %c128_61], %86 {strides = array<i32>} : memref<8x384xf32, #tpu.memory_space<vmem>>, vector<8x160xf32>,
    %cst_62 = arith.constant 0.000000e+00 : f32
    %88 = vector.broadcast %cst_62 : f32 to vector<8x16xf32>
    %c0_i32_63 = arith.constant 0 : i32
    %89 = arith.cmpi eq, %arg1, %c0_i32_63 : i32
    %90 = arith.extui %89 : i1 to i32
    %c0_i32_64 = arith.constant 0 : i32
    %91 = arith.cmpi ne, %90, %c0_i32_64 : i32
    scf.if %91 {
      %c0_129 = arith.constant 0 : index
      %c128_130 = arith.constant 128 : index
      %168 = vector.load %arg12[%c0_129, %c128_130] : memref<8x384xf32, #tpu.memory_space<vmem>>, vector<8x16xf32>
      tpu.vector_store %arg12[%c0_129, %c128_130], %88 {strides = array<i32>} : memref<8x384xf32, #tpu.memory_space<vmem>>, vector<8x16xf32>,
    } else {
    }
    %c1_i32_65 = arith.constant 1 : i32
    %92 = arith.cmpi eq, %arg1, %c1_i32_65 : i32
    %93 = arith.extui %92 : i1 to i32
    %c0_i32_66 = arith.constant 0 : i32
    %94 = arith.cmpi ne, %93, %c0_i32_66 : i32
    scf.if %94 {
      %c0_129 = arith.constant 0 : index
      %c272 = arith.constant 272 : index
      %168 = vector.load %arg12[%c0_129, %c272] : memref<8x384xf32, #tpu.memory_space<vmem>>, vector<8x16xf32>
      tpu.vector_store %arg12[%c0_129, %c272], %88 {strides = array<i32>} : memref<8x384xf32, #tpu.memory_space<vmem>>, vector<8x16xf32>,
    } else {
    }
    %c128_i32 = arith.constant 128 : i32
    %95 = vector.broadcast %c128_i32 : i32 to vector<1x384xi32>
    %96 = arith.cmpi sge, %0, %95 : vector<1x384xi32>
    %c288_i32_67 = arith.constant 288 : i32
    %97 = vector.broadcast %c288_i32_67 : i32 to vector<1x384xi32>
    %98 = arith.cmpi slt, %0, %97 : vector<1x384xi32>
    %99 = arith.andi %96, %98 : vector<1x384xi1>
    %c128_i32_68 = arith.constant 128 : i32
    %100 = vector.broadcast %c128_i32_68 : i32 to vector<1x384xi32>
    %101 = arith.subi %0, %100 : vector<1x384xi32>
    %c16_i32_69 = arith.constant 16 : i32
    %c0_i32_70 = arith.constant 0 : i32
    %102 = arith.cmpi eq, %c16_i32_69, %c0_i32_70 : i32
    %c1_i32_71 = arith.constant 1 : i32
    %103 = arith.select %102, %c1_i32_71, %c16_i32_69 : i32
    %104 = vector.broadcast %103 : i32 to vector<1x384xi32>
    %105 = arith.remsi %101, %104 : vector<1x384xi32>
    %c0_i32_72 = arith.constant 0 : i32
    %106 = vector.broadcast %c0_i32_72 : i32 to vector<1x384xi32>
    %107 = arith.cmpi ne, %105, %106 : vector<1x384xi32>
    %c0_i32_73 = arith.constant 0 : i32
    %108 = vector.broadcast %c0_i32_73 : i32 to vector<1x384xi32>
    %109 = arith.cmpi slt, %105, %108 : vector<1x384xi32>
    %c0_i32_74 = arith.constant 0 : i32
    %110 = arith.cmpi slt, %103, %c0_i32_74 : i32
    %111 = vector.broadcast %110 : i1 to vector<1x384xi1>
    %112 = vector.broadcast %111 : vector<1x384xi1> to vector<1x384xi1>
    %113 = arith.xori %109, %112 : vector<1x384xi1>
    %114 = arith.andi %113, %107 : vector<1x384xi1>
    %115 = vector.broadcast %103 : i32 to vector<1x384xi32>
    %116 = arith.addi %105, %115 : vector<1x384xi32>
    %117 = arith.select %114, %116, %105 : vector<1x384xi1>, vector<1x384xi32>
    %c0_75 = arith.constant 0 : index
    %c0_76 = arith.constant 0 : index
    %118 = vector.load %arg12[%c0_75, %c0_76] : memref<8x384xf32, #tpu.memory_space<vmem>>, vector<8x384xf32>
    %cst_77 = arith.constant 0.000000e+00 : f32
    %119 = vector.broadcast %cst_77 : f32 to vector<8x384xf32>
    %c15_i32_78 = arith.constant 15 : i32
    %120 = vector.broadcast %c15_i32_78 : i32 to vector<1x384xi32>
    %121 = arith.cmpi eq, %117, %120 : vector<1x384xi32>
    %cst_79 = arith.constant dense<true> : vector<1x384xi1>
    %122 = arith.xori %99, %cst_79 : vector<1x384xi1>
    %123 = arith.ori %121, %122 : vector<1x384xi1>
    %124 = vector.shape_cast %123 : vector<1x384xi1> to vector<1x384xi1>
    %125 = vector.broadcast %124 : vector<1x384xi1> to vector<8x384xi1>
    %126 = arith.select %125, %119, %118 : vector<8x384xi1>, vector<8x384xf32>
    %c0_80 = arith.constant 0 : index
    %c0_81 = arith.constant 0 : index
    %127 = vector.load %arg13[%c0_80, %c0_81] : memref<8x384xf32, #tpu.memory_space<vmem>>, vector<8x384xf32>
    tpu.vector_store %arg13[%c0_80, %c0_81], %126 {strides = array<i32>} : memref<8x384xf32, #tpu.memory_space<vmem>>, vector<8x384xf32>,
    %c0_i32_82 = arith.constant 0 : i32
    %128 = vector.broadcast %c0_i32_82 : i32 to vector<1x384xi32>
    %129 = arith.cmpi eq, %117, %128 : vector<1x384xi32>
    %cst_83 = arith.constant dense<true> : vector<1x384xi1>
    %130 = arith.xori %99, %cst_83 : vector<1x384xi1>
    %131 = arith.ori %129, %130 : vector<1x384xi1>
    %132 = vector.shape_cast %131 : vector<1x384xi1> to vector<1x384xi1>
    %133 = vector.broadcast %132 : vector<1x384xi1> to vector<8x384xi1>
    %134 = arith.select %133, %119, %118 : vector<8x384xi1>, vector<8x384xf32>
    %c0_84 = arith.constant 0 : index
    %c0_85 = arith.constant 0 : index
    %135 = vector.load %arg14[%c0_84, %c0_85] : memref<8x384xf32, #tpu.memory_space<vmem>>, vector<8x384xf32>
    tpu.vector_store %arg14[%c0_84, %c0_85], %134 {strides = array<i32>} : memref<8x384xf32, #tpu.memory_space<vmem>>, vector<8x384xf32>,
    %c0_86 = arith.constant 0 : index
    %c127_87 = arith.constant 127 : index
    %136 = vector.load %arg13[%c0_86, %c127_87] : memref<8x384xf32, #tpu.memory_space<vmem>>, vector<8x128xf32>
    %c0_88 = arith.constant 0 : index
    %c0_89 = arith.constant 0 : index
    %137 = vector.load %arg15[%c0_88, %c0_89] : memref<72x160xf32, #tpu.memory_space<vmem>>, vector<8x128xf32>
    tpu.vector_store %arg15[%c0_88, %c0_89], %136 {strides = array<i32>} : memref<72x160xf32, #tpu.memory_space<vmem>>, vector<8x128xf32>,
    %c0_90 = arith.constant 0 : index
    %c128_91 = arith.constant 128 : index
    %138 = vector.load %arg12[%c0_90, %c128_91] : memref<8x384xf32, #tpu.memory_space<vmem>>, vector<8x128xf32>
    %c8_92 = arith.constant 8 : index
    %c0_93 = arith.constant 0 : index
    %139 = vector.load %arg15[%c8_92, %c0_93] : memref<72x160xf32, #tpu.memory_space<vmem>>, vector<8x128xf32>
    tpu.vector_store %arg15[%c8_92, %c0_93], %138 {strides = array<i32>} : memref<72x160xf32, #tpu.memory_space<vmem>>, vector<8x128xf32>,
    %c0_94 = arith.constant 0 : index
    %c129_95 = arith.constant 129 : index
    %140 = vector.load %arg14[%c0_94, %c129_95] : memref<8x384xf32, #tpu.memory_space<vmem>>, vector<8x128xf32>
    %c16_96 = arith.constant 16 : index
    %c0_97 = arith.constant 0 : index
    %141 = vector.load %arg15[%c16_96, %c0_97] : memref<72x160xf32, #tpu.memory_space<vmem>>, vector<8x128xf32>
    tpu.vector_store %arg15[%c16_96, %c0_97], %140 {strides = array<i32>} : memref<72x160xf32, #tpu.memory_space<vmem>>, vector<8x128xf32>,
    %c0_98 = arith.constant 0 : index
    %c143 = arith.constant 143 : index
    %142 = vector.load %arg13[%c0_98, %c143] : memref<8x384xf32, #tpu.memory_space<vmem>>, vector<8x128xf32>
    %c24_99 = arith.constant 24 : index
    %c0_100 = arith.constant 0 : index
    %143 = vector.load %arg15[%c24_99, %c0_100] : memref<72x160xf32, #tpu.memory_space<vmem>>, vector<8x128xf32>
    tpu.vector_store %arg15[%c24_99, %c0_100], %142 {strides = array<i32>} : memref<72x160xf32, #tpu.memory_space<vmem>>, vector<8x128xf32>,
    %c0_101 = arith.constant 0 : index
    %c144 = arith.constant 144 : index
    %144 = vector.load %arg12[%c0_101, %c144] : memref<8x384xf32, #tpu.memory_space<vmem>>, vector<8x128xf32>
    %c32_102 = arith.constant 32 : index
    %c0_103 = arith.constant 0 : index
    %145 = vector.load %arg15[%c32_102, %c0_103] : memref<72x160xf32, #tpu.memory_space<vmem>>, vector<8x128xf32>
    tpu.vector_store %arg15[%c32_102, %c0_103], %144 {strides = array<i32>} : memref<72x160xf32, #tpu.memory_space<vmem>>, vector<8x128xf32>,
    %c0_104 = arith.constant 0 : index
    %c145 = arith.constant 145 : index
    %146 = vector.load %arg14[%c0_104, %c145] : memref<8x384xf32, #tpu.memory_space<vmem>>, vector<8x128xf32>
    %c40_105 = arith.constant 40 : index
    %c0_106 = arith.constant 0 : index
    %147 = vector.load %arg15[%c40_105, %c0_106] : memref<72x160xf32, #tpu.memory_space<vmem>>, vector<8x128xf32>
    tpu.vector_store %arg15[%c40_105, %c0_106], %146 {strides = array<i32>} : memref<72x160xf32, #tpu.memory_space<vmem>>, vector<8x128xf32>,
    %c0_107 = arith.constant 0 : index
    %c159 = arith.constant 159 : index
    %148 = vector.load %arg13[%c0_107, %c159] : memref<8x384xf32, #tpu.memory_space<vmem>>, vector<8x128xf32>
    %c48_108 = arith.constant 48 : index
    %c0_109 = arith.constant 0 : index
    %149 = vector.load %arg15[%c48_108, %c0_109] : memref<72x160xf32, #tpu.memory_space<vmem>>, vector<8x128xf32>
    tpu.vector_store %arg15[%c48_108, %c0_109], %148 {strides = array<i32>} : memref<72x160xf32, #tpu.memory_space<vmem>>, vector<8x128xf32>,
    %c0_110 = arith.constant 0 : index
    %c160 = arith.constant 160 : index
    %150 = vector.load %arg12[%c0_110, %c160] : memref<8x384xf32, #tpu.memory_space<vmem>>, vector<8x128xf32>
    %c56_111 = arith.constant 56 : index
    %c0_112 = arith.constant 0 : index
    %151 = vector.load %arg15[%c56_111, %c0_112] : memref<72x160xf32, #tpu.memory_space<vmem>>, vector<8x128xf32>
    tpu.vector_store %arg15[%c56_111, %c0_112], %150 {strides = array<i32>} : memref<72x160xf32, #tpu.memory_space<vmem>>, vector<8x128xf32>,
    %c0_113 = arith.constant 0 : index
    %c161 = arith.constant 161 : index
    %152 = vector.load %arg14[%c0_113, %c161] : memref<8x384xf32, #tpu.memory_space<vmem>>, vector<8x128xf32>
    %c64_114 = arith.constant 64 : index
    %c0_115 = arith.constant 0 : index
    %153 = vector.load %arg15[%c64_114, %c0_115] : memref<72x160xf32, #tpu.memory_space<vmem>>, vector<8x128xf32>
    tpu.vector_store %arg15[%c64_114, %c0_115], %152 {strides = array<i32>} : memref<72x160xf32, #tpu.memory_space<vmem>>, vector<8x128xf32>,
    %c0_116 = arith.constant 0 : index
    %c0_117 = arith.constant 0 : index
    %154 = vector.load %arg8[%c0_116, %c0_117] : memref<8x72xf32, #tpu.memory_space<vmem>>, vector<8x72xf32>
    %c0_118 = arith.constant 0 : index
    %c0_119 = arith.constant 0 : index
    %155 = vector.load %arg15[%c0_118, %c0_119] : memref<72x160xf32, #tpu.memory_space<vmem>>, vector<72x128xf32>
    %cst_120 = arith.constant dense<0.000000e+00> : vector<8x128xf32>
    %156 = tpu.matmul %154, %155, %cst_120 {dimension_numbers = #tpu.dot_dimension_numbers<[1], [0], [0], [1], [0, 0, 1, 1], [], []>} : vector<8x72xf32>, vector<72x128xf32>, vector<8x128xf32> -> vector<8x128xf32>
    %c0_121 = arith.constant 0 : index
    %c0_122 = arith.constant 0 : index
    %157 = vector.load %arg9[%c0_121, %c0_122] : memref<8x1xf32, #tpu.memory_space<vmem>>, vector<8x1xf32>
    %158 = vector.broadcast %157 : vector<8x1xf32> to vector<8x128xf32>
    %159 = arith.mulf %156, %158 : vector<8x128xf32>
    %c0_123 = arith.constant 0 : index
    %c0_124 = arith.constant 0 : index
    %160 = vector.load %arg10[%c0_123, %c0_124] : memref<8x1xf32, #tpu.memory_space<vmem>>, vector<8x1xf32>
    %161 = vector.broadcast %160 : vector<8x1xf32> to vector<8x128xf32>
    %162 = arith.addf %159, %161 : vector<8x128xf32>
    %cst_125 = arith.constant 0.000000e+00 : f32
    %163 = vector.broadcast %cst_125 : f32 to vector<8x128xf32>
    %164 = arith.maximumf %162, %163 : vector<8x128xf32>
    %c0_126 = arith.constant 0 : index
    %c0_127 = arith.constant 0 : index
    %c0_128 = arith.constant 0 : index
    %165 = vector.load %arg11[%c0_126, %c0_127, %c0_128] : memref<1x8x128xf32, #tpu.memory_space<vmem>>, vector<1x8x128xf32>
    %166 = vector.shape_cast %165 : vector<1x8x128xf32> to vector<8x128xf32>
    %167 = vector.shape_cast %164 : vector<8x128xf32> to vector<1x8x128xf32>
    tpu.vector_store %arg11[%c0_126, %c0_127, %c0_128], %167 {strides = array<i32>} : memref<1x8x128xf32, #tpu.memory_space<vmem>>, vector<1x8x128xf32>,
    return
  }
  func.func @transform_0(%arg0: i32, %arg1: i32) -> (i32, i32, i32) {
    %c0_i32 = arith.constant 0 : i32
    %c0_i32_0 = arith.constant 0 : i32
    return %arg0, %c0_i32, %arg1 : i32, i32, i32
  }
  func.func @transform_1(%arg0: i32, %arg1: i32) -> (i32, i32, i32) {
    %c1_i32 = arith.constant 1 : i32
    %0 = arith.muli %arg1, %c1_i32 : i32
    %c1_i32_0 = arith.constant 1 : i32
    %1 = arith.subi %0, %c1_i32_0 : i32
    %c0_i32 = arith.constant 0 : i32
    %2 = arith.maxsi %1, %c0_i32 : i32
    %c0_i32_1 = arith.constant 0 : i32
    %c0_i32_2 = arith.constant 0 : i32
    return %arg0, %c0_i32_1, %2 : i32, i32, i32
  }
  func.func @transform_2(%arg0: i32, %arg1: i32) -> (i32, i32, i32) {
    %c1_i32 = arith.constant 1 : i32
    %0 = arith.addi %arg1, %c1_i32 : i32
    %c1_i32_0 = arith.constant 1 : i32
    %1 = arith.muli %0, %c1_i32_0 : i32
    %c1_i32_1 = arith.constant 1 : i32
    %2 = arith.minsi %1, %c1_i32_1 : i32
    %c0_i32 = arith.constant 0 : i32
    %c0_i32_2 = arith.constant 0 : i32
    return %arg0, %c0_i32, %2 : i32, i32, i32
  }
  func.func @transform_3(%arg0: i32, %arg1: i32) -> (i32, i32) {
    %c0_i32 = arith.constant 0 : i32
    %c0_i32_0 = arith.constant 0 : i32
    %c0_i32_1 = arith.constant 0 : i32
    return %c0_i32, %c0_i32_0 : i32, i32
  }
  func.func @transform_4(%arg0: i32, %arg1: i32) -> (i32, i32) {
    %c0_i32 = arith.constant 0 : i32
    %c0_i32_0 = arith.constant 0 : i32
    %c0_i32_1 = arith.constant 0 : i32
    return %c0_i32, %c0_i32_0 : i32, i32
  }
  func.func @transform_5(%arg0: i32, %arg1: i32) -> (i32, i32) {
    %c0_i32 = arith.constant 0 : i32
    %c0_i32_0 = arith.constant 0 : i32
    %c0_i32_1 = arith.constant 0 : i32
    return %c0_i32, %c0_i32_0 : i32, i32
  }
  func.func @transform_6(%arg0: i32, %arg1: i32) -> (i32, i32) {
    %c0_i32 = arith.constant 0 : i32
    %c0_i32_0 = arith.constant 0 : i32
    %c0_i32_1 = arith.constant 0 : i32
    return %c0_i32, %c0_i32_0 : i32, i32
  }
  func.func @transform_7(%arg0: i32, %arg1: i32) -> (i32, i32) {
    %c0_i32 = arith.constant 0 : i32
    %c0_i32_0 = arith.constant 0 : i32
    %c0_i32_1 = arith.constant 0 : i32
    return %c0_i32, %c0_i32_0 : i32, i32
  }
  func.func @transform_8(%arg0: i32, %arg1: i32) -> (i32, i32) {
    %c0_i32 = arith.constant 0 : i32
    %c0_i32_0 = arith.constant 0 : i32
    %c0_i32_1 = arith.constant 0 : i32
    return %c0_i32, %c0_i32_0 : i32, i32
  }
  func.func @transform_9(%arg0: i32, %arg1: i32) -> (i32, i32, i32) {
    %c0_i32 = arith.constant 0 : i32
    %c0_i32_0 = arith.constant 0 : i32
    return %arg0, %c0_i32, %arg1 : i32, i32, i32
  }
}

</mosaic_0001>

<bundles_post_ra>
// kernel: double_conv.1
= control target key start
LH: loop header
LB: loop body
LE: loop exit
PB: predicated region body
PF: predicated region fallthrough
CT: control target
= control target key end

     0   :  { %s1523_s30 = smov 0   ;;  %s1525_s10 = smov 0   ;;  %s1732_s0 = inlined_call_operand.vmem [shape: f32[2,4,256], index: 0, kind: input, shape index: {}, may-alias: {0,1,2}]   ;;  %s1733_s1 = inlined_call_operand.vmem [shape: f32[2,4,256], index: 1, kind: input, shape index: {}, may-alias: {0,1,2}]   ;;  %s1734_s2 = inlined_call_operand.vmem [shape: f32[2,4,256], index: 2, kind: input, shape index: {}, may-alias: {0,1,2}]   ;;  %s1735_s3 = inlined_call_operand.vmem [shape: f32[8,72], index: 3, kind: input, shape index: {}]   ;;  %s1736_s4 = inlined_call_operand.vmem [shape: f32[8,1], index: 4, kind: input, shape index: {}]   ;;  %s1737_s5 = inlined_call_operand.vmem [shape: f32[8,1], index: 5, kind: input, shape index: {}]   ;;  %s1738_s6 = inlined_call_operand.vmem [shape: f32[8,72], index: 6, kind: input, shape index: {}]   ;;  %s1739_s7 = inlined_call_operand.vmem [shape: f32[8,1], index: 7, kind: input, shape index: {}]   ;;  %s1740_s8 = inlined_call_operand.vmem [shape: f32[8,1], index: 8, kind: input, shape index: {}]   ;;  %s1741_s9 = inlined_call_operand.vmem [shape: f32[2,8,256], index: 9, kind: output, shape index: {}]  }
   0x1   :  { %s1527_s11 = smov 0   ;;  %s1529_s12 = smov 0  }
   0x2   :  { %s1531_s13 = smov 0  }
   0x3 LB: > { %s28_s14 = sadd.s32 1, %s1442_s11  ;;  %s31_s15 = sadd.s32 1, %s1446_s12  ;;  %s1450_s13 = sphi %s1531_s13, %s19_s13   ;;  %s1446_s12 = sphi %s1529_s12, %s1754_s12   ;;  %s1442_s11 = sphi %s1527_s11, %s1753_s11   ;;  %s1438_s10 = sphi %s1525_s10, %s1752_s10   ;;  %s1434_s30 = sphi %s1523_s30, %s1751_s30  }
   0x4   : > { %p29_p0 = scmp.ge.s32.totalorder %s28_s14, 2  ;;  %p1256_p1 = scmp.ge.s32.totalorder %s1450_s13, 1 }
   0x5   : > { %p360_p2 = scmp.lt.s32.totalorder %s1450_s13, 5 }
   0x6   : > { %s1756_s14 = smov (%p29_p0, %s28_s14), 0  ;;  %s1758_s15 = smov (!%p29_p0, %s31_s15), %s1446_s12 }
   0x7   : > { %p361_p3 = pnand %p1256_p1, %p360_p2  ;;  %p33_p4 = scmp.ge.s32.totalorder %s1758_s15, 2 }
   0x8   : > { %p424_p5 = scmp.lt.s32.totalorder (!%p361_p3), %s1438_s10, 1  ;;  %p426_p6 = scmp.lt.s32.totalorder (!%p361_p3), %s1434_s30, 1  ;;  %v468_v0 = vlaneseq (!%p361_p3)  ;;  %v1452_v1 = vmov (!%p361_p3), 0.0   ;;  %vm481_vm4 = vcmask (!%p361_p3), 1044224   ;;  %vm1455_vm9 = vmmov (!%p361_p3), 1   ;;  %v818_v38 = vld [vmem:[%s1736_s4] sm:$0xff] (!%p361_p3) }
   0x9   : > { %s1760_s15 = smov (%p33_p4, %s1758_s15), 0  ;;  %364 = sbr.rel (%p361_p3) target bundleno = 796 (0x31c), region = 56 }
   0xa   : > { %491 = vst [vmem:[#allocation2 + $0x8] sm:$0xf0] (!%p361_p3), %v1452_v1  ;;  %490 = vst [vmem:[#allocation2] sm:$0xf0] (!%p361_p3), %v1452_v1  ;;  %811 = vmatprep.mubr.f32.mxu0 (!%p361_p3), %v1452_v1  ;;  %v1560_v2 = vand.u32 (!%p361_p3), 127, %v468_v0  ;;  %s1259_s18 = sadd.s32 (!%p361_p3), 4294967295, %s1434_s30 }
   0xb   : > { %492 = vst [vmem:[#allocation2 + $0x10] sm:$0xf0] (!%p361_p3), %v1452_v1  ;;  %p433_p7 = scmp.gt.s32.totalorder (!%p361_p3), %s1259_s18, 0  ;;  %p1260_p8 = scmp.lt.s32.totalorder (!%p361_p3), %s1259_s18, 1  ;;  %vm488_vm14 = vcmask (!%p361_p3), 257024   ;;  %v1462_v37 = vmov (!%p361_p3), 0  }
   0xc   : > { %v470_v3 = vadd.s32 (!%p361_p3), 128, %v1560_v2  ;;  %v1274_v4 = vadd.s32 (!%p361_p3), 4294967200, %v1560_v2  ;;  %p476_p9 = scmp.eq.s32.totalorder (!%p361_p3), %s1434_s30, 0  ;;  %s446_s29 = sadd.s32 (!%p361_p3), 1, %s1434_s30  ;;  %v1590_v14 = vadd.s32 (!%p361_p3), 256, %v1560_v2  ;;  %vm493_vm5 = vcmp.ge.s32.totalorder (!%p361_p3), %v1560_v2, 96  ;;  %1408 = vset.pattern.permute.xlu1 (!%p361_p3), %v1462_v37  ;;  %1409 = vset.pattern.permute.xlu0 (!%p361_p3), %v1462_v37 }
   0xd   : > { %p483_p10 = scmp.eq.s32.totalorder (!%p361_p3), %s1434_s30, 1  ;;  %p1581_p11 = scmp.lt.s32.totalorder (!%p361_p3), %s446_s29, 1  ;;  %vm547_vm10 = vmxor (!%p361_p3), %vm493_vm5, %vm1455_vm9  ;;  %v826_v39 = vld [vmem:[%s1737_s5] sm:$0xff] (!%p361_p3) }
   0xe   : > { %v1275_v5 = vadd.s32 (!%p361_p3), 4294967200, %v470_v3  ;;  %v506_v6 = vsub.s32 (!%p361_p3), 0, %v1274_v4  ;;  %vm505_vm0 = vcmp.lt.s32.totalorder (!%p361_p3), %v1274_v4, 0  ;;  %s1453_s23 = smov (!%p361_p3), 16   ;;  %v1276_v24 = vadd.s32 (!%p361_p3), 4294967200, %v1590_v14  ;;  %p1279_p12 = scmp.ne.s32.totalorder (!%p361_p3), %s1434_s30, 0 }
  0x10   : > { %s1762_s10 = smov (!%p424_p5, %s1438_s10), 1  ;;  %v1277_v8 = vmin.u32 %v1274_v4, %v506_v6  ;;  %v516_v9 = vand.u32 15, %v1275_v5  ;;  %s1766_s29 = smov (!%p1581_p11, %s446_s29), 1  ;;  %v523_v27 = vand.u32 15, %v1276_v24 }
  0x11   : > { %s427_s16 = scalar_select %p426_p6, %s1434_s30, 1 }
  0x12   : > { %s1563_s17 = sshll.u32 %s1762_s10, 1  ;;  %v509_v10 = vand.u32 15, %v1277_v8  ;;  %vm1585_vm1 = vcmp.eq.s32.totalorder %v516_v9, 15  ;;  %vm1592_vm2 = vcmp.eq.s32.totalorder %v516_v9, 0  ;;  %s1768_s29 = smov (!%p1581_p11, %s1766_s29), 1 }
  0x13   : > { %s429_s19 = sadd.s32 %s1563_s17, %s427_s16  ;;  %s454_s26 = sadd.s32 %s1563_s17, %s1768_s29 }
  0x14   : > { %s1258_s20 = sshll.u32 %s429_s19, 2  ;;  %s1273_s21 = sshll.u32 %s429_s19, 3  ;;  %v510_v11 = vsub.s32 0, %v509_v10 }
  0x15   : > { %s431_s24 = scalar_lea.vmem %s1732_s0, %s1258_s20  ;;  %s1575_s27 = scalar_lea.vmem %s1741_s9, %s1273_s21 }
  0x16   : > { %v472_v7 = vld [vmem:[%s431_s24] sm:$0xf]  ;;  %s434_s28 = scalar_select %p433_p7, %s1259_s18, 0  ;;  %v511_v17 = vsel %vm505_vm0, %v510_v11, %v509_v10  ;;  %vm498_vm0 = vcmp.lt.s32.totalorder %v1590_v14, 288 }
  0x17   : > { %473 = vst [vmem:[#allocation2 + $0x8] sm:$0xf] %v472_v7  ;;  %s477_s10 = scalar_select %p476_p9, 1, 0  ;;  %vm526_vm6 = vcmp.ne.s32.totalorder %v511_v17, 0  ;;  %vm529_vm7 = vcmp.lt.s32.totalorder %v511_v17, 0 }
  0x18   : > { %s1764_s28 = smov (!%p1260_p8, %s434_s28), 1  ;;  %s1454_s24 = smov 32   ;;  %vm532_vm8 = vmand %vm529_vm7, %vm526_vm6  ;;  %v535_v23 = vadd.s32 16, %v511_v17  ;;  %vm596_vm7 = vcmask 261120  }
  0x19   : > { %s440_s16 = sadd.s32 %s1764_s28, %s1563_s17  ;;  %v478_v12 = vstv %s477_s10  ;;  %s1271_s28 = sshll.u32 %s454_s26, 2 }
  0x1a   : > { %s1266_s20 = sshll.u32 %s440_s16, 2  ;;  %vm1599_vm3 = vcmp.eq.s32.totalorder %v478_v12, 1  ;;  %v538_v26 = vsel %vm532_vm8, %v535_v23, %v511_v17  ;;  %s1456_s17 = smov 33   ;;  %vm661_vm8 = vcmask 130048  }
  0x1b   : > { %s442_s22 = scalar_lea.vmem %s1733_s1, %s1266_s20  ;;  %vm544_vm11 = vcmp.eq.s32.totalorder %v538_v26, 15  ;;  %vm565_vm12 = vcmp.eq.s32.totalorder %v538_v26, 0  ;;  %s456_s20 = scalar_lea.vmem %s1734_s2, %s1271_s28 }
  0x1c   : > { %v474_v19 = vld [vmem:[%s442_s22] sm:$0xf]  ;;  %s484_s25 = scalar_select %p483_p10, 1, 0  ;;  %vm550_vm15 = vmor %vm544_vm11, %vm547_vm10  ;;  %vm591_vm11 = vcmask 269312  }
  0x1d   : > { %v480_v20 = vsel %vm1599_vm3, 0.0, %v474_v19  ;;  %v475_v28 = vld [vmem:[%s456_s20] sm:$0xf]  ;;  %vm567_vm3 = vcmp.eq.s32.totalorder %v523_v27, 0  ;;  %s1457_s29 = smov 31   ;;  %s1458_s19 = smov 17  }
  0x1e   : > { %v1604_v18 = vld [vmem:[#allocation2 + $0x8] sm:$0xff]  ;;  %482 = vst.msk [vmem:[#allocation2] sm:$0xf] %vm481_vm4, %v480_v20  ;;  %v485_v25 = vstv %s484_s25  ;;  %vm546_vm4 = vcmp.eq.s32.totalorder %v523_v27, 15  ;;  %s1459_s18 = smov 15   ;;  %s1460_s21 = smov 1  }
  0x1f   : > { %657 = vrot.lane.b32.xlu0 %v1604_v18, %s1453_s23  ;;  %604 = vrot.lane.b32.xlu1 %v1604_v18, %s1454_s24  ;;  %v560_v21 = vsel %vm1585_vm1, 0.0, %v1604_v18  ;;  %v578_v22 = vsel %vm1592_vm2, 0.0, %v1604_v18  ;;  %vm486_vm13 = vcmp.eq.s32.totalorder %v485_v25, 1  ;;  %vm568_vm1 = vmor %vm565_vm12, %vm547_vm10  ;;  %s1461_s22 = smov 127   ;;  %vm642_vm10 = vcmask 138240  }
  0x20   : > { %v487_v29 = vsel %vm486_vm13, 0.0, %v475_v28  ;;  %vm1637_vm2 = vmxor %vm498_vm0, %vm1455_vm9  ;;  %vm623_vm9 = vcmask 252928   ;;  %vm680_vm12 = vcmask 121856   ;;  %vm699_vm13 = vcmask 7168  }
  0x21   : > { %489 = vst.msk [vmem:[#allocation2 + $0x10] sm:$0xf] %vm488_vm14, %v487_v29  ;;  %vm570_vm5 = vmor %vm567_vm3, %vm1637_vm2  ;;  %vm718_vm14 = vcmask 1039360  }
  0x22   : > { %vm552_vm6 = vmor %vm546_vm4, %vm1637_vm2 }
  0x25   : > { %v649_v30 = vld [vmem:[#allocation2] sm:$0xff] }
  0x26   : > { %655 = vrot.lane.b32.xlu0 %v649_v30, %s1453_s23  ;;  %602 = vrot.lane.b32.xlu1 %v649_v30, %s1454_s24  ;;  %v559_v32 = vsel %vm550_vm15, 0.0, %v649_v30  ;;  %v577_v33 = vsel %vm568_vm1, 0.0, %v649_v30  ;;  %vm743_vm15 = vcmask 588800  }
  0x28   : > { %v651_v34 = vld [vmem:[#allocation2 + $0x10] sm:$0xff] }
  0x29   : > { %v579_v35 = vsel %vm570_vm5, 0.0, %v651_v34  ;;  %v561_v36 = vsel %vm552_vm6, 0.0, %v651_v34  ;;  %709 = vst.msk [vmem:[#allocation5 + $0x78] sm:$0xff] %vm596_vm7, %v651_v34 }
  0x2a   : > { %589 = vrot.lane.b32.xlu0 %v560_v21, %s1456_s17  ;;  %659 = vrot.lane.b32.xlu1 %v651_v34, %s1453_s23 }
  0x2e   : > { %619 = vrot.lane.b32.xlu0 %v578_v22, %s1457_s29  ;;  %621 = vrot.lane.b32.xlu1 %v579_v35, %s1457_s29 }
  0x30   : > { %v740_v26 = vld [vmem:[#allocation5 + $0x78] sm:$0xff] }
  0x32   : > { %638 = vrot.lane.b32.xlu0 %v560_v21, %s1458_s19  ;;  %640 = vrot.lane.b32.xlu1 %v561_v36, %s1458_s19 }
  0x36   : > { %676 = vrot.lane.b32.xlu0 %v578_v22, %s1459_s18  ;;  %636 = vrot.lane.b32.xlu1 %v559_v32, %s1458_s19 }
  0x3a   : > { %587 = vrot.lane.b32.xlu0 %v559_v32, %s1456_s17  ;;  %678 = vrot.lane.b32.xlu1 %v579_v35, %s1459_s18 }
  0x3e   : > { %617 = vrot.lane.b32.xlu0 %v577_v33, %s1457_s29  ;;  %674 = vrot.lane.b32.xlu1 %v577_v33, %s1459_s18 }
  0x42   : > { %695 = vrot.lane.b32.xlu0 %v560_v21, %s1460_s21  ;;  %697 = vrot.lane.b32.xlu1 %v561_v36, %s1460_s21 }
  0x46   : > { %693 = vrot.lane.b32.xlu0 %v559_v32, %s1460_s21  ;;  %714 = vrot.lane.b32.xlu1 %v578_v22, %s1461_s22  ;;  %v724_v32 = vld [vmem:[%s1735_s3] sm:$0xff] }
  0x4a   : > { %716 = vrot.lane.b32.xlu0 %v579_v35, %s1461_s22  ;;  %821 = vperm.xlu1 %1408, %v818_v38  }
  0x4e   : > { %829 = vperm.xlu0 %1409, %v826_v39  }
  0x91   : > { %v605_v40 = vpop.permute.xlu1 %604  ;;  %v658_v41 = vpop.permute.xlu0 %657 }
  0x92   : > { %610 = vst.msk [vmem:[#allocation5 + $0x18] sm:$0xff] %vm596_vm7, %v605_v40 }
  0x98   : > { %v656_v42 = vpop.permute.xlu0 %655  ;;  %v603_v43 = vpop.permute.xlu1 %602 }
  0x99   : > { %v662_v44 = vsel %vm661_vm8, %v656_v42, %v658_v41  ;;  %v606_v45 = vsel %vm596_vm7, %v603_v43, %v605_v40  ;;  %v728_v54 = vld [vmem:[#allocation5 + $0x18] sm:$0xff]  ;;  %v1463_v43 = vmov (!%p1279_p12), 0.0  }
  0x9c   : > { %v590_v46 = vpop.permute.xlu0 %589  ;;  %v660_v47 = vpop.permute.xlu1 %659 }
  0x9d   : > { %597 = vst.msk [vmem:[#allocation5 + $0x8] sm:$0xff] %vm596_vm7, %v590_v46  ;;  %v663_v48 = vsel %vm661_vm8, %v658_v41, %v660_v47 }
  0x9e   : > { %667 = vst.msk [vmem:[#allocation5 + $0x48] sm:$0xff] %vm596_vm7, %v663_v48 }
  0xa0   : > { %v620_v49 = vpop.permute.xlu0 %619  ;;  %v622_v50 = vpop.permute.xlu1 %621 }
  0xa1   : > { %v625_v51 = vsel %vm623_vm9, %v620_v49, %v622_v50 }
  0xa2   : > { %629 = vst.msk [vmem:[#allocation5 + $0x28] sm:$0xff] %vm596_vm7, %v625_v51 }
  0xa4   : > { %v639_v52 = vpop.permute.xlu0 %638  ;;  %v726_v53 = vld [vmem:[#allocation5 + $0x8] sm:$0xff]  ;;  %v641_v56 = vpop.permute.xlu1 %640 }
  0xa5   : > { %v1319_v55 = vpack.c.bf16 %v728_v54, %v726_v53  ;;  %v644_v57 = vsel %vm642_vm10, %v639_v52, %v641_v56  ;;  %v734_v17 = vld [vmem:[#allocation5 + $0x48] sm:$0xff] }
  0xa6   : > { %648 = vst.msk [vmem:[#allocation5 + $0x38] sm:$0xff] %vm596_vm7, %v644_v57 }
  0xa7   : > { %1320 = vmatprep.subr.bf16.mxu0 %v1319_v55 }
  0xa8   : > { %v677_v58 = vpop.permute.xlu0 %676  ;;  %v637_v59 = vpop.permute.xlu1 %636 }
  0xa9   : > { %v643_v60 = vsel %vm642_vm10, %v637_v59, %v639_v52  ;;  %v730_v5 = vld [vmem:[#allocation5 + $0x28] sm:$0xff] }
  0xac   : > { %v588_v61 = vpop.permute.xlu0 %587  ;;  %v679_v0 = vpop.permute.xlu1 %678 }
  0xad   : > { %v592_v62 = vsel %vm591_vm11, %v588_v61, %v590_v46  ;;  %v682_v3 = vsel %vm680_vm12, %v677_v58, %v679_v0  ;;  %v732_v6 = vld [vmem:[#allocation5 + $0x38] sm:$0xff] }
  0xae   : > { %v1321_v63 = vpack.c.bf16 %v606_v45, %v592_v62  ;;  %686 = vst.msk [vmem:[#allocation5 + $0x58] sm:$0xff] %vm596_vm7, %v682_v3  ;;  %v1323_v8 = vpack.c.bf16 %v732_v6, %v730_v5 }
  0xb0   : > { %v618_v4 = vpop.permute.xlu0 %617  ;;  %1322 = vmatpush1.bf16.msra.mxu0 %v1321_v63  ;;  %v675_v10 = vpop.permute.xlu1 %674 }
  0xb1   : > { %v624_v7 = vsel %vm623_vm9, %v618_v4, %v620_v49  ;;  %1324 = vmatprep.subr.bf16.mxu0 %v1323_v8  ;;  %v681_v11 = vsel %vm680_vm12, %v675_v10, %v677_v58 }
  0xb2   : > { %v1325_v9 = vpack.c.bf16 %v643_v60, %v624_v7  ;;  %v1329_v22 = vpack.c.bf16 %v681_v11, %v662_v44 }
  0xb4   : > { %v696_v12 = vpop.permute.xlu0 %695  ;;  %1326 = vmatpush1.bf16.msra.mxu0 %v1325_v9  ;;  %v698_v13 = vpop.permute.xlu1 %697 }
  0xb5   : > { %v701_v15 = vsel %vm699_vm13, %v696_v12, %v698_v13  ;;  %v736_v19 = vld [vmem:[#allocation5 + $0x58] sm:$0xff] }
  0xb6   : > { %705 = vst.msk [vmem:[#allocation5 + $0x68] sm:$0xff] %vm596_vm7, %v701_v15  ;;  %v1327_v21 = vpack.c.bf16 %v736_v19, %v734_v17 }
  0xb8   : > { %v694_v16 = vpop.permute.xlu0 %693  ;;  %1328 = vmatprep.subr.bf16.mxu0 %v1327_v21  ;;  %v715_v23 = vpop.permute.xlu1 %714 }
  0xb9   : > { %v700_v20 = vsel %vm699_vm13, %v694_v16, %v696_v12  ;;  %1330 = vmatpush1.bf16.msra.mxu0 %v1329_v22 }
  0xba   : > { %v1333_v29 = vpack.c.bf16 %v1604_v18, %v700_v20 }
  0xbc   : > { %v717_v24 = vpop.permute.xlu0 %716 }
  0xbd   : > { %v719_v25 = vsel %vm718_vm14, %v715_v23, %v717_v24  ;;  %723 = vst.msk [vmem:[#allocation5 + $0x88] sm:$0xff] %vm596_vm7, %v717_v24  ;;  %v738_v27 = vld [vmem:[#allocation5 + $0x68] sm:$0xff] }
  0xbe   : > { %v1331_v28 = vpack.c.bf16 %v740_v26, %v738_v27 }
  0xc0   : > { %1332 = vmatprep.subr.bf16.mxu0 %v1331_v28 }
  0xc1   : > { %1334 = vmatpush1.bf16.msra.mxu0 %v1333_v29 }
  0xc4   : > { %v742_v30 = vld [vmem:[#allocation5 + $0x88] sm:$0xff] }
  0xc5   : > { %763 = vmatprep.subr.mxu0 %v742_v30 }
  0xc6   : > { %764 = vmatpush1.msra.mxu0 %v719_v25 }
  0xc7   : > { %1278 = vmatmul.mubr.msk.f32.vlgmr.msra.gmra.mrb[0].mxu0 %vm743_vm15, %v724_v32 }
  0xc9   : > { %v822_v33 = vpop.permute.xlu1 %821 }
  0xcd   : > { %v830_v35 = vpop.permute.xlu0 %829 }
 0x19a   : > { %v813_v34 = vpop.f32.mrb[0].mxu0 }
 0x19b   : > { %v824_v36 = vmul.f32 %v822_v33, %v813_v34  ;;  %v815_v38 = vpop.f32.mrb[1].mxu0 }
 0x19c   : > { %v825_v39 = vmul.f32 %v822_v33, %v815_v38  ;;  %840 = sbr.rel (%p1279_p12) target bundleno = 420 (0x1a4), region = 60 }
 0x19d   : > { %v832_v40 = vadd.f32 %v830_v35, %v824_v36 }
 0x19e   : > { %v833_v18 = vadd.f32 %v830_v35, %v825_v39 }
 0x19f   : > { %v834_v41 = vmax.f32 %v832_v40, 0.0 }
 0x1a0   : > { %v835_v42 = vmax.f32 %v833_v18, 0.0 }
 0x1a1   : > { %836 = vst [vmem:[#allocation2 + $0x8] sm:$0xff] %v834_v41 }
 0x1a2   : > { %837 = vst.msk [vmem:[#allocation2 + $0x10] sm:$0xff] %vm596_vm7, %v835_v42 }
 0x1a3   : > { %841 = vst.msk [vmem:[#allocation2 + $0x8] sm:$0xff] %vm661_vm8, %v1463_v43 }
 0x1a4 PF: > { %p1280_p13 = scmp.ne.s32.totalorder %s1434_s30, 1 }
 0x1a5   : > { %vm845_vm0 = vcmask (!%p1280_p13), 261248   ;;  %v1464_v44 = vmov (!%p1280_p13), 0.0  }
 0x1a6   : > { %844 = sbr.rel (%p1280_p13) target bundleno = 429 (0x1ad), region = 64  ;;  %846 = vst.msk [vmem:[#allocation2 + $0x10] sm:$0xff] (!%p1280_p13), %vm845_vm0, %v1464_v44 }
 0x1ad PF: > { %v969_v45 = vld [vmem:[#allocation2 + $0x8] sm:$0xff]  ;;  %v970_v46 = vld [vmem:[#allocation2 + $0x10] sm:$0xff]  ;;  %v866_v47 = vand.u32 15, %v1560_v2  ;;  %v1282_v48 = vadd.s32 4294967168, %v1590_v14  ;;  %1410 = vset.pattern.permute.xlu0 %v1462_v37  ;;  %1411 = vset.pattern.permute.xlu1 %v1462_v37  ;;  %s1465_s16 = smov 112   ;;  %v1466_v50 = vmov 0.0|0.0  }
 0x1ae   : > { %973 = vrot.lane.b32.xlu0 %v969_v45, %s1465_s16  ;;  %975 = vrot.lane.b32.xlu1 %v970_v46, %s1465_s16  ;;  %s1467_s30 = smov 113   ;;  %s1468_s20 = smov 111   ;;  %vm1469_vm8 = vmmov 0   ;;  %v1112_v31 = vld [vmem:[%s1739_s7] sm:$0xff]  ;;  %vm965_vm9 = vcmask 924672   ;;  %vm989_vm10 = vcmask 908288  }
 0x1af   : > { %vm916_vm1 = vcmp.eq.s32.totalorder %v866_v47, 0  ;;  %vm895_vm3 = vcmp.eq.s32.totalorder %v866_v47, 15  ;;  %v873_v49 = vand.u32 15, %v1282_v48  ;;  %1335 = vmatprep.subr.bf16.mxu1 %v1466_v50  ;;  %1316 = vmatprep.mubr.msk.f32.mxu1 %vm1469_vm8, %v1452_v1  ;;  %s1470_s17 = smov 97   ;;  %s1471_s29 = smov 96   ;;  %v1119_v37 = vld [vmem:[%s1740_s8] sm:$0xff] }
 0x1b0   : > { %v928_v51 = vsel %vm916_vm1, 0.0, %v969_v45  ;;  %v910_v52 = vsel %vm895_vm3, 0.0, %v969_v45  ;;  %s1472_s19 = smov 95   ;;  %vm1001_vm11 = vcmask 793600   ;;  %vm1013_vm12 = vcmask 785408   ;;  %v1029_v21 = vld [vmem:[%s1738_s6] sm:$0xff] }
 0x1b1   : > { %vm917_vm4 = vcmp.eq.s32.totalorder %v873_v49, 0  ;;  %vm896_vm5 = vcmp.eq.s32.totalorder %v873_v49, 15 }
 0x1b2   : > { %937 = vrot.lane.b32.xlu0 %v1452_v1, %s1460_s21  ;;  %950 = vrot.lane.b32.xlu1 %v928_v51, %s1461_s22  ;;  %vm920_vm6 = vmor %vm917_vm4, %vm1637_vm2 }
 0x1b3   : > { %v929_v2 = vsel %vm920_vm6, 0.0, %v970_v46  ;;  %vm902_vm7 = vmor %vm896_vm5, %vm1637_vm2  ;;  %vm977_vm2 = vcmask 916480  }
 0x1b4   : > { %v911_v14 = vsel %vm902_vm7, 0.0, %v970_v46 }
 0x1b6   : > { %939 = vrot.lane.b32.xlu0 %v910_v52, %s1460_s21  ;;  %952 = vrot.lane.b32.xlu1 %v929_v2, %s1461_s22 }
 0x1ba   : > { %961 = vrot.lane.b32.xlu0 %v910_v52, %s1467_s30  ;;  %963 = vrot.lane.b32.xlu1 %v911_v14, %s1467_s30 }
 0x1be   : > { %985 = vrot.lane.b32.xlu0 %v928_v51, %s1468_s20  ;;  %987 = vrot.lane.b32.xlu1 %v929_v2, %s1468_s20 }
 0x1c2   : > { %997 = vrot.lane.b32.xlu0 %v910_v52, %s1470_s17  ;;  %999 = vrot.lane.b32.xlu1 %v911_v14, %s1470_s17 }
 0x1c6   : > { %1009 = vrot.lane.b32.xlu0 %v969_v45, %s1471_s29  ;;  %1011 = vrot.lane.b32.xlu1 %v970_v46, %s1471_s29 }
 0x1ca   : > { %1021 = vrot.lane.b32.xlu0 %v928_v51, %s1472_s19  ;;  %1023 = vrot.lane.b32.xlu1 %v929_v2, %s1472_s19 }
 0x1ce   : > { %1115 = vperm.xlu0 %1410, %v1112_v31   ;;  %1122 = vperm.xlu1 %1411, %v1119_v37  }
 0x220   : > { %v974_v53 = vpop.permute.xlu0 %973  ;;  %v976_v54 = vpop.permute.xlu1 %975 }
 0x221   : > { %v978_v55 = vsel %vm977_vm2, %v974_v53, %v976_v54 }
 0x224   : > { %v938_v56 = vpop.permute.xlu0 %937  ;;  %v951_v57 = vpop.permute.xlu1 %950 }
 0x228   : > { %v940_v58 = vpop.permute.xlu0 %939  ;;  %v953_v59 = vpop.permute.xlu1 %952 }
 0x229   : > { %v941_v60 = vsel %vm699_vm13, %v938_v56, %v940_v58  ;;  %v954_v61 = vsel %vm718_vm14, %v951_v57, %v953_v59  ;;  %vm1025_vm13 = vcmask 777216  }
 0x22a   : > { %v1336_v62 = vpack.c.bf16 %v969_v45, %v941_v60 }
 0x22c   : > { %v962_v63 = vpop.permute.xlu0 %961  ;;  %v964_v0 = vpop.permute.xlu1 %963  ;;  %1337 = vmatpush3.bf16.msra.mxu1 %v1336_v62 }
 0x22d   : > { %v966_v3 = vsel %vm965_vm9, %v962_v63, %v964_v0  ;;  %1338 = vmatprep.subr.bf16.mxu1 %v1466_v50 }
 0x22e   : > { %v1339_v4 = vpack.c.bf16 %v966_v3, %v954_v61 }
 0x230   : > { %v986_v5 = vpop.permute.xlu0 %985  ;;  %v988_v6 = vpop.permute.xlu1 %987  ;;  %1340 = vmatpush3.bf16.msra.mxu1 %v1339_v4 }
 0x231   : > { %v990_v7 = vsel %vm989_vm10, %v986_v5, %v988_v6  ;;  %1341 = vmatprep.subr.bf16.mxu1 %v1466_v50 }
 0x232   : > { %v1342_v8 = vpack.c.bf16 %v990_v7, %v978_v55 }
 0x234   : > { %v998_v9 = vpop.permute.xlu0 %997  ;;  %v1000_v10 = vpop.permute.xlu1 %999  ;;  %1343 = vmatpush3.bf16.msra.mxu1 %v1342_v8 }
 0x235   : > { %v1002_v11 = vsel %vm1001_vm11, %v998_v9, %v1000_v10  ;;  %1344 = vmatprep.subr.bf16.mxu1 %v1466_v50 }
 0x238   : > { %v1010_v12 = vpop.permute.xlu0 %1009  ;;  %v1012_v13 = vpop.permute.xlu1 %1011 }
 0x239   : > { %v1014_v15 = vsel %vm1013_vm12, %v1010_v12, %v1012_v13 }
 0x23a   : > { %v1345_v16 = vpack.c.bf16 %v1014_v15, %v1002_v11 }
 0x23c   : > { %v1022_v17 = vpop.permute.xlu0 %1021  ;;  %v1024_v19 = vpop.permute.xlu1 %1023  ;;  %1346 = vmatpush3.bf16.msra.mxu1 %v1345_v16 }
 0x23d   : > { %v1026_v20 = vsel %vm1025_vm13, %v1022_v17, %v1024_v19  ;;  %1314 = vmatprep.subr.mxu1 %v1452_v1 }
 0x240   : > { %1315 = vmatpush3.msra.mxu1 %v1026_v20 }
 0x241   : > { %1317 = vmatmul.mubr.msk.f32.vlgmr.msra.gmra.mrb[0].mxu1 %vm743_vm15, %v1029_v21 }
 0x24d   : > { %v1116_v22 = vpop.permute.xlu0 %1115  ;;  %v1123_v24 = vpop.permute.xlu1 %1122 }
 0x314   : > { %v1108_v23 = vpop.f32.mrb[0].mxu1 }
 0x315   : > { %v1118_v25 = vmul.f32 %v1116_v22, %v1108_v23  ;;  %v1318_v26 = vpop.f32.mrb[1].mxu1 }
 0x317   : > { %v1125_v27 = vadd.f32 %v1123_v24, %v1118_v25 }
 0x319   : > { %v1126_v28 = vmax.f32 %v1125_v27, 0.0 }
 0x31b   : > { %1127 = vst [vmem:[%s1575_s27] sm:$0xff] %v1126_v28 }
 0x31c PF: > { %s19_s13 = sadd.s32 1, %s1450_s13   ;;  %s1751_s30 = smov %s1442_s11 }
 0x31d   : > { %p16_p0 = scmp.ge.s32.totalorder %s19_s13, 6   ;;  %s1752_s10 = smov %s1446_s12 }
 0x31e   : > { %s1753_s11 = smov %s1756_s14  ;;  %s1754_s12 = smov %s1760_s15 }
 0x31f   :  { %18 = sbr.rel (!%p16_p0) target bundleno = 3 (0x3), region = 100 }

</bundles_post_ra>
